<compile_context>
chip_gen: v7x
topology: tpu7x:2x2x1
jax: 0.10.0
libtpu: 0.0.40
codegen_flags: <defaults>
</compile_context>

<pallas_src>
import functools

import jax
import jax.numpy as jnp
import numpy as np
from jax.experimental import pallas as pl
from jax.experimental.pallas import tpu as pltpu

EPS = 1e-8     # self.eps
EPSS = 1e-12   # self.epss

_VMEM_BUDGET = 40 * 2**20      # keep per-step footprint well inside v7x's 64 MiB


# ----------------------------------------------------------------------------- kernel
def _fused_kernel(inv_t_ref, x_ref, y_ref, a_ref, hx_ref, invn_ref,
                  sh_ref, uh_ref, uwbd_ref, out_ref, *, W, r, L):
    """One grid step = G channels packed on the lane axis (block last dim L=G*W)."""
    f32 = jnp.float32
    x = x_ref[...]                                   # (H, L)
    y = y_ref[...]
    a = jnp.abs(a_ref[...]) + EPSS                   # attention
    inv_t = inv_t_ref[0, 0]                          # 1 / t_all (SMEM scalar)

    ax = a * x
    ay = a * y
    # six box-filter inputs stacked along lanes -> one filtering pass
    q = jnp.concatenate([a, ax, ay, ax * ay, ax * ax, a * ax], axis=1)   # (H, 6L)

    # ---- W-direction box sum: masked lane rolls (XLU, overlaps the MXU) ----
    # lane index mod W = within-channel column; the mask kills contributions
    # that would cross a channel (or slab) boundary, so the circular roll is safe.
    w_idx = jax.lax.broadcasted_iota(jnp.int32, q.shape, 1) % W
    ncols = q.shape[1]
    s = q
    for d in range(1, r + 1):
        s = s + jnp.where(w_idx >= d, pltpu.roll(q, shift=d, axis=1), 0.0)
        s = s + jnp.where(w_idx <= (W - 1) - d,
                          pltpu.roll(q, shift=ncols - d, axis=1), 0.0)

    # ---- H-direction box sum: one (H, H) band matmul on the stacked slab ----
    box = jnp.dot(sh_ref[...], s, preferred_element_type=f32)            # (H, 6L)

    invN = invn_ref[...]                              # 1 / box window size
    m_a    = box[:, 0 * L:1 * L] * invN
    m_ax   = box[:, 1 * L:2 * L] * invN
    m_ay   = box[:, 2 * L:3 * L] * invN
    m_a2xy = box[:, 3 * L:4 * L] * invN
    m_a2x2 = box[:, 4 * L:5 * L] * invN
    t      = box[:, 5 * L:6 * L] * inv_t              # == N * mean_tax

    temp = jnp.abs(m_a2x2 - t * m_ax)
    # exact divides kept (approx reciprocal was flagged as a tolerance risk)
    A = (m_a2xy - t * m_ay) / (temp + EPS)
    b = (m_ay - A * m_ax) / m_a

    # ---- bilinear upsample: rows then cols, A and b stacked per pass --------
    ab = jnp.concatenate([A, b], axis=1)                                  # (H, 2L)
    ru = jnp.dot(uh_ref[...], ab, preferred_element_type=f32)             # (Hh, 2L)
    ru2 = jnp.concatenate([ru[:, :L], ru[:, L:]], axis=0)                 # (2Hh, L)
    cu = jnp.dot(ru2, uwbd_ref[...], preferred_element_type=f32)          # (2Hh, Lh)

    hh = out_ref.shape[0]
    out_ref[...] = cu[:hh, :] * hx_ref[...] + cu[hh:, :]


# ----------------------------------------------------------------------------- glue
def _box_counts(H, W, r):
    ih = jnp.arange(H)
    ch = jnp.minimum(ih + r, H - 1) - jnp.maximum(ih - r, 0) + 1
    iw = jnp.arange(W)
    cw = jnp.minimum(iw + r, W - 1) - jnp.maximum(iw - r, 0) + 1
    return (ch[:, None] * cw[None, :]).astype(jnp.float32)


def _band_sum_matrix(n, r):
    # (Sh @ v) == box sum along rows (0/1 band, no normalisation)
    idx = jnp.arange(n)
    return (jnp.abs(idx[:, None] - idx[None, :]) <= r).astype(jnp.float32)


def _block_diag(M, G):
    p, q = M.shape
    eye = jnp.eye(G, dtype=M.dtype)
    return (eye[:, None, :, None] * M[None, :, None, :]).reshape(G * p, G * q)


def _bilinear_matrix(out_size, in_size):
    # F.upsample(..., mode='bilinear') == F.interpolate(align_corners=False)
    # TODO(synk): pre-0.4 PyTorch defaulted to align_corners=True; flip here if
    # the target checkpoint relies on the legacy semantics.
    scale = in_size / out_size
    i = jnp.arange(out_size, dtype=jnp.float32)
    src = jnp.clip((i + 0.5) * scale - 0.5, 0.0, float(in_size - 1))
    lo = jnp.floor(src).astype(jnp.int32)
    hi = jnp.minimum(lo + 1, in_size - 1)
    w_hi = src - lo.astype(jnp.float32)
    w_lo = 1.0 - w_hi
    rows = jnp.arange(out_size)
    M = jnp.zeros((out_size, in_size), jnp.float32)
    M = M.at[rows, lo].add(w_lo)
    M = M.at[rows, hi].add(w_hi)
    return M


def _vmem_estimate(H, W, Hh, Wh, g):
    """Rough per-step VMEM footprint (bytes) for channel-group size g."""
    L, Lh = g * W, g * Wh
    f = 4
    io = 2 * (3 * H * L + 2 * Hh * Lh) * f              # double-buffered x/y/a/hx/out
    weights = (H * L + H * H + Hh * H + L * Lh) * f      # invN, Sh, Uh, UwBD (x1)
    temps = (24 * H * L + 8 * Hh * L + 6 * Hh * Lh) * f  # stacked slabs, A/b, upsample
    return io + weights + temps


def _pick_group(NC, H, W, Hh, Wh):
    # channels per grid step.  Blocks split the lane axis, so g*W and g*Wh must
    # be multiples of 128 (or the block must span the whole array, g == NC).
    divs = [g for g in range(1, NC + 1) if NC % g == 0]
    aligned = [g for g in divs
               if (g * W) % 128 == 0 and (g * Wh) % 128 == 0
               and _vmem_estimate(H, W, Hh, Wh, g) <= _VMEM_BUDGET]
    if aligned:
        for min_steps in (4, 2):      # keep the pipeline (and both v7x TCs) busy
            c = [g for g in aligned if NC // g >= min_steps]
            if c:
                return max(c)
        return min(aligned)
    # TODO(synk): no lane-aligned channel group exists (awkward W); fall back to
    # one whole-array block.  Channel padding would be needed to tile this case
    # for very large inputs.
    return NC


def _const_spec(shape):
    # grid-invariant weights: single-buffer them when pipeline_mode is available
    # (halves their VMEM footprint — matters most on v7x / v5e).
    if hasattr(pl, "Buffered"):
        try:
            return pl.BlockSpec(shape, lambda g: (0, 0),
                                pipeline_mode=pl.Buffered(1))
        except TypeError:
            pass
    return pl.BlockSpec(shape, lambda g: (0, 0))


@functools.partial(jax.jit, static_argnames=("r",))
def fast_guided_filter_attention(lr_x, lr_y, hr_x, l_a, *, r):
    n, cx, H, W = lr_x.shape
    _, cy, h2, w2 = lr_y.shape
    _, chx, Hh, Wh = hr_x.shape
    assert lr_y.shape[0] == n and hr_x.shape[0] == n
    assert cx == chx and (cx == 1 or cx == cy)
    assert (h2, w2) == (H, W)
    assert H > 2 * r + 1 and W > 2 * r + 1
    C = cy

    lr_x = lr_x.astype(jnp.float32)
    lr_y = lr_y.astype(jnp.float32)
    hr_x = hr_x.astype(jnp.float32)
    l_a = l_a.astype(jnp.float32)

    # global attention normaliser (XLA reduce); computed BEFORE any channel
    # broadcast so it matches torch.sum(l_a) exactly.
    t_all = jnp.sum(jnp.abs(l_a) + EPSS)
    inv_t = (1.0 / t_all).reshape(1, 1).astype(jnp.float32)

    if cx == 1:
        # TODO(synk): materialises the broadcast in HBM; an index_map-only
        # broadcast (share one guide block per batch) would cut input DMA ~Cx.
        lr_x = jnp.broadcast_to(lr_x, (n, C, H, W))
        l_a = jnp.broadcast_to(l_a, (n, C, H, W))
        hr_x = jnp.broadcast_to(hr_x, (n, C, Hh, Wh))

    NC = n * C
    G = _pick_group(NC, H, W, Hh, Wh)
    L, Lh = G * W, G * Wh

    # channels-on-lanes layout: (n, C, H, W) -> (H, n*C*W); each grid block then
    # has last dim G*W (lane-dense, tile-aligned, unmasked stores).
    x2 = jnp.transpose(lr_x, (2, 0, 1, 3)).reshape(H, NC * W)
    y2 = jnp.transpose(lr_y, (2, 0, 1, 3)).reshape(H, NC * W)
    a2 = jnp.transpose(l_a, (2, 0, 1, 3)).reshape(H, NC * W)
    hx2 = jnp.transpose(hr_x, (2, 0, 1, 3)).reshape(Hh, NC * Wh)

    # weights (small; no (G*H)^2 block-diagonals)
    Sh = _band_sum_matrix(H, r)                            # (H, H)
    Uh = _bilinear_matrix(Hh, H)                           # (Hh, H)
    UwBD = _block_diag(_bilinear_matrix(Wh, W).T, G)       # (L, Lh) per-channel cols
    invN = jnp.tile(1.0 / _box_counts(H, W, r), (1, G))    # (H, L)

    est = _vmem_estimate(H, W, Hh, Wh, G)
    vmem_limit = int(min(max(2 * est, 32 * 2**20), 64 * 2**20))

    kernel = functools.partial(_fused_kernel, W=W, r=r, L=L)

    out2 = pl.pallas_call(
        kernel,
        out_shape=jax.ShapeDtypeStruct((Hh, NC * Wh), jnp.float32),
        grid=(NC // G,),
        in_specs=[
            pl.BlockSpec(memory_space=pltpu.MemorySpace.SMEM),      # inv_t (1,1)
            pl.BlockSpec((H, L), lambda g: (0, g)),                 # lr_x
            pl.BlockSpec((H, L), lambda g: (0, g)),                 # lr_y
            pl.BlockSpec((H, L), lambda g: (0, g)),                 # l_a
            pl.BlockSpec((Hh, Lh), lambda g: (0, g)),               # hr_x
            _const_spec((H, L)),                                    # 1/N counts
            _const_spec((H, H)),                                    # Sh band
            _const_spec((Hh, H)),                                   # Uh
            _const_spec((L, Lh)),                                   # Uw^T block-diag
        ],
        out_specs=pl.BlockSpec((Hh, Lh), lambda g: (0, g)),
        compiler_params=pltpu.CompilerParams(
            dimension_semantics=("parallel",),
            vmem_limit_bytes=vmem_limit),
    )(inv_t, x2, y2, a2, hx2, invN, Sh, Uh, UwBD)

    return jnp.transpose(out2.reshape(Hh, n, C, Wh), (1, 2, 0, 3))


# ----------------------------------------------------------------------------- reference (plain JAX, sanity check)
def _reference(lr_x, lr_y, hr_x, l_a, r):
    lr_x, lr_y = lr_x.astype(jnp.float32), lr_y.astype(jnp.float32)
    hr_x, l_a = hr_x.astype(jnp.float32), l_a.astype(jnp.float32)
    n, cx, H, W = lr_x.shape
    Hh, Wh = hr_x.shape[2:]
    a = jnp.abs(l_a) + EPSS
    t_all = jnp.sum(a)
    l_t = a / t_all
    Ncnt = _box_counts(H, W, r)[None, None]

    def box(v):
        p = jnp.pad(v, ((0, 0), (0, 0), (r, r), (r, r)))
        s = jnp.zeros_like(v)
        for di in range(2 * r + 1):
            for dj in range(2 * r + 1):
                s = s + p[:, :, di:di + H, dj:dj + W]
        return s

    mean_a = box(a) / Ncnt
    mean_a2xy = box(a * a * lr_x * lr_y) / Ncnt
    mean_tax = box(l_t * a * lr_x) / Ncnt
    mean_ay = box(a * lr_y) / Ncnt
    mean_a2x2 = box(a * a * lr_x * lr_x) / Ncnt
    mean_ax = box(a * lr_x) / Ncnt
    temp = jnp.abs(mean_a2x2 - Ncnt * mean_tax * mean_ax)
    A = (mean_a2xy - Ncnt * mean_tax * mean_ay) / (temp + EPS)
    b = (mean_ay - A * mean_ax) / mean_a
    Uh = _bilinear_matrix(Hh, H)
    Uw = _bilinear_matrix(Wh, W)
    A_hr = jnp.einsum("hH,ncHW,wW->nchw", Uh, A, Uw)
    b_hr = jnp.einsum("hH,ncHW,wW->nchw", Uh, b, Uw)
    return A_hr * hr_x + b_hr


# ----------------------------------------------------------------------------- main
if __name__ == "__main__":
    key = jax.random.PRNGKey(0)
    k1, k2, k3, k4 = jax.random.split(key, 4)

    n, C, Hl, Wl, Hh, Wh, r = 2, 4, 16, 16, 32, 32, 2
    lr_x = jax.random.normal(k1, (n, C, Hl, Wl), jnp.float32)
    lr_y = jax.random.normal(k2, (n, C, Hl, Wl), jnp.float32)
    hr_x = jax.random.normal(k3, (n, C, Hh, Wh), jnp.float32)
    l_a = jax.random.uniform(k4, (n, C, Hl, Wl), jnp.float32, 0.1, 1.0)

    out = fast_guided_filter_attention(lr_x, lr_y, hr_x, l_a, r=r)
    out = jax.block_until_ready(out)

    assert out.shape == (n, C, Hh, Wh) and out.dtype == jnp.float32
    ref = _reference(lr_x, lr_y, hr_x, l_a, r)
    np.testing.assert_allclose(np.asarray(out), np.asarray(ref), rtol=2e-3, atol=2e-3)

    print("KERNEL_OK")
</pallas_src>

<mosaic_0001>
module attributes {stable_mosaic.version = 11 : i64} {
  func.func private @main(%arg0: i32) attributes {dimension_semantics = [#tpu.dimension_semantics<core_parallel>], iteration_bounds = array<i64: 2>, tpu.core_type = #tpu.core_type<sc_scalar_subcore>, window_params = []} {
    return
  }
}

module attributes {stable_mosaic.version = 11 : i64} {
  func.func private @main(%arg0: i32) attributes {dimension_semantics = [#tpu.dimension_semantics<core_parallel>], iteration_bounds = array<i64: 2>, tpu.core_type = #tpu.core_type<sc_scalar_subcore>, window_params = []} {
    return
  }
}

module attributes {stable_mosaic.version = 11 : i64} {
  func.func @_fused_kernel(%arg0: i32, %arg1: memref<1x1xf32, #tpu.memory_space<smem>>, %arg2: memref<16x128xf32, #tpu.memory_space<vmem>>, %arg3: memref<16x128xf32, #tpu.memory_space<vmem>>, %arg4: memref<16x128xf32, #tpu.memory_space<vmem>>, %arg5: memref<32x256xf32, #tpu.memory_space<vmem>>, %arg6: memref<16x128xf32, #tpu.memory_space<vmem>>, %arg7: memref<16x16xf32, #tpu.memory_space<vmem>>, %arg8: memref<32x16xf32, #tpu.memory_space<vmem>>, %arg9: memref<128x256xf32, #tpu.memory_space<vmem>>, %arg10: memref<32x256xf32, #tpu.memory_space<vmem>>) attributes {dimension_semantics = [#tpu.dimension_semantics<parallel>], iteration_bounds = array<i64: 1>, scalar_prefetch = 0 : i64, scratch_operands = 0 : i64, tpu.core_type = #tpu.core_type<tc>, window_params = [{transform_indices = @transform_0, window_bounds = array<i64: 1, 1>}, {transform_indices = @transform_1, window_bounds = array<i64: 16, 128>}, {transform_indices = @transform_2, window_bounds = array<i64: 16, 128>}, {transform_indices = @transform_3, window_bounds = array<i64: 16, 128>}, {transform_indices = @transform_4, window_bounds = array<i64: 32, 256>}, {pipeline_mode = #tpu.pipeline_mode<synchronous>, transform_indices = @transform_5, window_bounds = array<i64: 16, 128>}, {pipeline_mode = #tpu.pipeline_mode<synchronous>, transform_indices = @transform_6, window_bounds = array<i64: 16, 16>}, {pipeline_mode = #tpu.pipeline_mode<synchronous>, transform_indices = @transform_7, window_bounds = array<i64: 32, 16>}, {pipeline_mode = #tpu.pipeline_mode<synchronous>, transform_indices = @transform_8, window_bounds = array<i64: 128, 256>}, {transform_indices = @transform_9, window_bounds = array<i64: 32, 256>}]} {
    %c0 = arith.constant 0 : index
    %c0_0 = arith.constant 0 : index
    %0 = vector.load %arg2[%c0, %c0_0] : memref<16x128xf32, #tpu.memory_space<vmem>>, vector<16x128xf32>
    %c0_1 = arith.constant 0 : index
    %c0_2 = arith.constant 0 : index
    %1 = vector.load %arg3[%c0_1, %c0_2] : memref<16x128xf32, #tpu.memory_space<vmem>>, vector<16x128xf32>
    %c0_3 = arith.constant 0 : index
    %c0_4 = arith.constant 0 : index
    %2 = vector.load %arg4[%c0_3, %c0_4] : memref<16x128xf32, #tpu.memory_space<vmem>>, vector<16x128xf32>
    %3 = math.absf %2 : vector<16x128xf32>
    %cst = arith.constant 9.99999996E-13 : f32
    %4 = vector.broadcast %cst : f32 to vector<16x128xf32>
    %5 = arith.addf %3, %4 : vector<16x128xf32>
    %c0_5 = arith.constant 0 : index
    %c0_6 = arith.constant 0 : index
    %6 = memref.load %arg1[%c0_5, %c0_6] : memref<1x1xf32, #tpu.memory_space<smem>>
    %7 = arith.mulf %5, %0 : vector<16x128xf32>
    %8 = arith.mulf %5, %1 : vector<16x128xf32>
    %9 = arith.mulf %7, %8 : vector<16x128xf32>
    %10 = arith.mulf %7, %7 : vector<16x128xf32>
    %11 = arith.mulf %5, %7 : vector<16x128xf32>
    %12 = tpu.concatenate %5, %7, %8, %9, %10, %11 in 1 : vector<16x128xf32>, vector<16x128xf32>, vector<16x128xf32>, vector<16x128xf32>, vector<16x128xf32>, vector<16x128xf32> -> vector<16x768xf32>
    %13 = tpu.iota {dimensions = array<i32: 1>} : vector<16x768xi32>
    %c16_i32 = arith.constant 16 : i32
    %c0_i32 = arith.constant 0 : i32
    %14 = arith.cmpi eq, %c16_i32, %c0_i32 : i32
    %c1_i32 = arith.constant 1 : i32
    %15 = arith.select %14, %c1_i32, %c16_i32 : i32
    %16 = vector.broadcast %15 : i32 to vector<16x768xi32>
    %17 = arith.remsi %13, %16 : vector<16x768xi32>
    %c0_i32_7 = arith.constant 0 : i32
    %18 = vector.broadcast %c0_i32_7 : i32 to vector<16x768xi32>
    %19 = arith.cmpi ne, %17, %18 : vector<16x768xi32>
    %c0_i32_8 = arith.constant 0 : i32
    %20 = vector.broadcast %c0_i32_8 : i32 to vector<16x768xi32>
    %21 = arith.cmpi slt, %17, %20 : vector<16x768xi32>
    %c0_i32_9 = arith.constant 0 : i32
    %22 = arith.cmpi slt, %15, %c0_i32_9 : i32
    %23 = vector.broadcast %22 : i1 to vector<16x768xi1>
    %24 = vector.broadcast %23 : vector<16x768xi1> to vector<16x768xi1>
    %25 = arith.xori %21, %24 : vector<16x768xi1>
    %26 = arith.andi %25, %19 : vector<16x768xi1>
    %27 = vector.broadcast %15 : i32 to vector<16x768xi32>
    %28 = arith.addi %17, %27 : vector<16x768xi32>
    %29 = arith.select %26, %28, %17 : vector<16x768xi1>, vector<16x768xi32>
    %c1_i32_10 = arith.constant 1 : i32
    %30 = vector.broadcast %c1_i32_10 : i32 to vector<16x768xi32>
    %31 = arith.cmpi sge, %29, %30 : vector<16x768xi32>
    %c1_i32_11 = arith.constant 1 : i32
    %32 = tpu.dynamic_rotate %12 by %c1_i32_11 dim 1 : vector<16x768xf32>, i32 -> vector<16x768xf32>
    %cst_12 = arith.constant 0.000000e+00 : f32
    %33 = vector.broadcast %cst_12 : f32 to vector<16x768xf32>
    %34 = arith.select %31, %32, %33 : vector<16x768xi1>, vector<16x768xf32>
    %35 = arith.addf %12, %34 : vector<16x768xf32>
    %c14_i32 = arith.constant 14 : i32
    %36 = vector.broadcast %c14_i32 : i32 to vector<16x768xi32>
    %37 = arith.cmpi sle, %29, %36 : vector<16x768xi32>
    %c767_i32 = arith.constant 767 : i32
    %38 = tpu.dynamic_rotate %12 by %c767_i32 dim 1 : vector<16x768xf32>, i32 -> vector<16x768xf32>
    %cst_13 = arith.constant 0.000000e+00 : f32
    %39 = vector.broadcast %cst_13 : f32 to vector<16x768xf32>
    %40 = arith.select %37, %38, %39 : vector<16x768xi1>, vector<16x768xf32>
    %41 = arith.addf %35, %40 : vector<16x768xf32>
    %c2_i32 = arith.constant 2 : i32
    %42 = vector.broadcast %c2_i32 : i32 to vector<16x768xi32>
    %43 = arith.cmpi sge, %29, %42 : vector<16x768xi32>
    %c2_i32_14 = arith.constant 2 : i32
    %44 = tpu.dynamic_rotate %12 by %c2_i32_14 dim 1 : vector<16x768xf32>, i32 -> vector<16x768xf32>
    %cst_15 = arith.constant 0.000000e+00 : f32
    %45 = vector.broadcast %cst_15 : f32 to vector<16x768xf32>
    %46 = arith.select %43, %44, %45 : vector<16x768xi1>, vector<16x768xf32>
    %47 = arith.addf %41, %46 : vector<16x768xf32>
    %c13_i32 = arith.constant 13 : i32
    %48 = vector.broadcast %c13_i32 : i32 to vector<16x768xi32>
    %49 = arith.cmpi sle, %29, %48 : vector<16x768xi32>
    %c766_i32 = arith.constant 766 : i32
    %50 = tpu.dynamic_rotate %12 by %c766_i32 dim 1 : vector<16x768xf32>, i32 -> vector<16x768xf32>
    %cst_16 = arith.constant 0.000000e+00 : f32
    %51 = vector.broadcast %cst_16 : f32 to vector<16x768xf32>
    %52 = arith.select %49, %50, %51 : vector<16x768xi1>, vector<16x768xf32>
    %53 = arith.addf %47, %52 : vector<16x768xf32>
    %c0_17 = arith.constant 0 : index
    %c0_18 = arith.constant 0 : index
    %54 = vector.load %arg7[%c0_17, %c0_18] : memref<16x16xf32, #tpu.memory_space<vmem>>, vector<16x16xf32>
    %cst_19 = arith.constant dense<0.000000e+00> : vector<16x768xf32>
    %55 = tpu.matmul %54, %53, %cst_19 {dimension_numbers = #tpu.dot_dimension_numbers<[1], [0], [0], [1], [0, 0, 1, 1], [], []>} : vector<16x16xf32>, vector<16x768xf32>, vector<16x768xf32> -> vector<16x768xf32>
    %c0_20 = arith.constant 0 : index
    %c0_21 = arith.constant 0 : index
    %56 = vector.load %arg6[%c0_20, %c0_21] : memref<16x128xf32, #tpu.memory_space<vmem>>, vector<16x128xf32>
    %57 = vector.extract_strided_slice %55 {offsets = [0, 0], sizes = [16, 128], strides = [1, 1]} : vector<16x768xf32> to vector<16x128xf32>
    %58 = arith.mulf %57, %56 : vector<16x128xf32>
    %59 = vector.extract_strided_slice %55 {offsets = [0, 128], sizes = [16, 128], strides = [1, 1]} : vector<16x768xf32> to vector<16x128xf32>
    %60 = arith.mulf %59, %56 : vector<16x128xf32>
    %61 = vector.extract_strided_slice %55 {offsets = [0, 256], sizes = [16, 128], strides = [1, 1]} : vector<16x768xf32> to vector<16x128xf32>
    %62 = arith.mulf %61, %56 : vector<16x128xf32>
    %63 = vector.extract_strided_slice %55 {offsets = [0, 384], sizes = [16, 128], strides = [1, 1]} : vector<16x768xf32> to vector<16x128xf32>
    %64 = arith.mulf %63, %56 : vector<16x128xf32>
    %65 = vector.extract_strided_slice %55 {offsets = [0, 512], sizes = [16, 128], strides = [1, 1]} : vector<16x768xf32> to vector<16x128xf32>
    %66 = arith.mulf %65, %56 : vector<16x128xf32>
    %67 = vector.extract_strided_slice %55 {offsets = [0, 640], sizes = [16, 128], strides = [1, 1]} : vector<16x768xf32> to vector<16x128xf32>
    %68 = vector.broadcast %6 : f32 to vector<16x128xf32>
    %69 = arith.mulf %67, %68 : vector<16x128xf32>
    %70 = arith.mulf %69, %60 : vector<16x128xf32>
    %71 = arith.subf %66, %70 : vector<16x128xf32>
    %72 = math.absf %71 : vector<16x128xf32>
    %73 = arith.mulf %69, %62 : vector<16x128xf32>
    %74 = arith.subf %64, %73 : vector<16x128xf32>
    %cst_22 = arith.constant 9.99999993E-9 : f32
    %75 = vector.broadcast %cst_22 : f32 to vector<16x128xf32>
    %76 = arith.addf %72, %75 : vector<16x128xf32>
    %77 = arith.divf %74, %76 : vector<16x128xf32>
    %78 = arith.mulf %77, %60 : vector<16x128xf32>
    %79 = arith.subf %62, %78 : vector<16x128xf32>
    %80 = arith.divf %79, %58 : vector<16x128xf32>
    %81 = tpu.concatenate %77, %80 in 1 : vector<16x128xf32>, vector<16x128xf32> -> vector<16x256xf32>
    %c0_23 = arith.constant 0 : index
    %c0_24 = arith.constant 0 : index
    %82 = vector.load %arg8[%c0_23, %c0_24] : memref<32x16xf32, #tpu.memory_space<vmem>>, vector<32x16xf32>
    %cst_25 = arith.constant dense<0.000000e+00> : vector<32x256xf32>
    %83 = tpu.matmul %82, %81, %cst_25 {dimension_numbers = #tpu.dot_dimension_numbers<[1], [0], [0], [1], [0, 0, 1, 1], [], []>} : vector<32x16xf32>, vector<16x256xf32>, vector<32x256xf32> -> vector<32x256xf32>
    %84 = vector.extract_strided_slice %83 {offsets = [0, 0], sizes = [32, 128], strides = [1, 1]} : vector<32x256xf32> to vector<32x128xf32>
    %85 = vector.extract_strided_slice %83 {offsets = [0, 128], sizes = [32, 128], strides = [1, 1]} : vector<32x256xf32> to vector<32x128xf32>
    %86 = tpu.concatenate %84, %85 in 0 : vector<32x128xf32>, vector<32x128xf32> -> vector<64x128xf32>
    %c0_26 = arith.constant 0 : index
    %c0_27 = arith.constant 0 : index
    %87 = vector.load %arg9[%c0_26, %c0_27] : memref<128x256xf32, #tpu.memory_space<vmem>>, vector<128x256xf32>
    %cst_28 = arith.constant dense<0.000000e+00> : vector<64x256xf32>
    %88 = tpu.matmul %86, %87, %cst_28 {dimension_numbers = #tpu.dot_dimension_numbers<[1], [0], [0], [1], [0, 0, 1, 1], [], []>} : vector<64x128xf32>, vector<128x256xf32>, vector<64x256xf32> -> vector<64x256xf32>
    %89 = vector.extract_strided_slice %88 {offsets = [0, 0], sizes = [32, 256], strides = [1, 1]} : vector<64x256xf32> to vector<32x256xf32>
    %c0_29 = arith.constant 0 : index
    %c0_30 = arith.constant 0 : index
    %90 = vector.load %arg5[%c0_29, %c0_30] : memref<32x256xf32, #tpu.memory_space<vmem>>, vector<32x256xf32>
    %91 = arith.mulf %89, %90 : vector<32x256xf32>
    %92 = vector.extract_strided_slice %88 {offsets = [32, 0], sizes = [32, 256], strides = [1, 1]} : vector<64x256xf32> to vector<32x256xf32>
    %93 = arith.addf %91, %92 : vector<32x256xf32>
    %c0_31 = arith.constant 0 : index
    %c0_32 = arith.constant 0 : index
    %94 = vector.load %arg10[%c0_31, %c0_32] : memref<32x256xf32, #tpu.memory_space<vmem>>, vector<32x256xf32>
    tpu.vector_store %arg10[%c0_31, %c0_32], %93 {strides = array<i32>} : memref<32x256xf32, #tpu.memory_space<vmem>>, vector<32x256xf32>,
    return
  }
  func.func @transform_0(%arg0: i32) -> (i32, i32) {
    %c0_i32 = arith.constant 0 : i32
    %c0_i32_0 = arith.constant 0 : i32
    %c0_i32_1 = arith.constant 0 : i32
    return %c0_i32, %c0_i32_0 : i32, i32
  }
  func.func @transform_1(%arg0: i32) -> (i32, i32) {
    %c0_i32 = arith.constant 0 : i32
    %c0_i32_0 = arith.constant 0 : i32
    return %c0_i32, %arg0 : i32, i32
  }
  func.func @transform_2(%arg0: i32) -> (i32, i32) {
    %c0_i32 = arith.constant 0 : i32
    %c0_i32_0 = arith.constant 0 : i32
    return %c0_i32, %arg0 : i32, i32
  }
  func.func @transform_3(%arg0: i32) -> (i32, i32) {
    %c0_i32 = arith.constant 0 : i32
    %c0_i32_0 = arith.constant 0 : i32
    return %c0_i32, %arg0 : i32, i32
  }
  func.func @transform_4(%arg0: i32) -> (i32, i32) {
    %c0_i32 = arith.constant 0 : i32
    %c0_i32_0 = arith.constant 0 : i32
    return %c0_i32, %arg0 : i32, i32
  }
  func.func @transform_5(%arg0: i32) -> (i32, i32) {
    %c0_i32 = arith.constant 0 : i32
    %c0_i32_0 = arith.constant 0 : i32
    %c0_i32_1 = arith.constant 0 : i32
    return %c0_i32, %c0_i32_0 : i32, i32
  }
  func.func @transform_6(%arg0: i32) -> (i32, i32) {
    %c0_i32 = arith.constant 0 : i32
    %c0_i32_0 = arith.constant 0 : i32
    %c0_i32_1 = arith.constant 0 : i32
    return %c0_i32, %c0_i32_0 : i32, i32
  }
  func.func @transform_7(%arg0: i32) -> (i32, i32) {
    %c0_i32 = arith.constant 0 : i32
    %c0_i32_0 = arith.constant 0 : i32
    %c0_i32_1 = arith.constant 0 : i32
    return %c0_i32, %c0_i32_0 : i32, i32
  }
  func.func @transform_8(%arg0: i32) -> (i32, i32) {
    %c0_i32 = arith.constant 0 : i32
    %c0_i32_0 = arith.constant 0 : i32
    %c0_i32_1 = arith.constant 0 : i32
    return %c0_i32, %c0_i32_0 : i32, i32
  }
  func.func @transform_9(%arg0: i32) -> (i32, i32) {
    %c0_i32 = arith.constant 0 : i32
    %c0_i32_0 = arith.constant 0 : i32
    return %c0_i32, %arg0 : i32, i32
  }
}

</mosaic_0001>

<bundles_post_ra>
// kernel: tile.9
= control target key start
LH: loop header
LB: loop body
LE: loop exit
PB: predicated region body
PF: predicated region fallthrough
CT: control target
= control target key end

     0   :  { %vm4_vm0 = vcmask 1047556   ;;  %s209_s14 = smov 96   ;;  %s210_s19 = smov 112   ;;  %vm6_vm1 = vcmask 130048   ;;  %vm25_vm2 = vcmask 1048448   ;;  %vm46_vm3 = vcmask 917248   ;;  %s388_s0 = inlined_call_operand.vmem [shape: f32[16,8,16], index: 0, kind: input, shape index: {}]   ;;  %s389_s1 = inlined_call_operand.vmem [shape: f32[16,128], index: 1, kind: output, shape index: {}]  }
   0x1   :  { %v172_v0 = vld [vmem:[%s388_s0 + $0x6] ss:$8 sm:$0xf]   ;;  %v167_v3 = vld [vmem:[%s388_s0 + $0x7] ss:$8 sm:$0xf]  }
   0x2   :  { %v173_v1 = vld [vmem:[%s388_s0 + $0x6] ss:$8 sm:$0xf0]   ;;  %v168_v4 = vld [vmem:[%s388_s0 + $0x7] ss:$8 sm:$0xf0]  }
   0x3   :  { %v43_v2 = vsel %vm4_vm0, %v173_v1, %v172_v0  ;;  %v22_v5 = vsel %vm4_vm0, %v168_v4, %v167_v3  ;;  %v174_v6 = vld [vmem:[%s388_s0 + $0x46] ss:$8 sm:$0xf]   ;;  %v169_v9 = vld [vmem:[%s388_s0 + $0x47] ss:$8 sm:$0xf]  }
   0x4   :  { %44 = vrot.lane.b32.xlu1 %v43_v2, %s209_s14  ;;  %v175_v7 = vld [vmem:[%s388_s0 + $0x46] ss:$8 sm:$0xf0]   ;;  %23 = vrot.lane.b32.xlu0 %v22_v5, %s210_s19  ;;  %v170_v10 = vld [vmem:[%s388_s0 + $0x47] ss:$8 sm:$0xf0]  }
   0x5   :  { %v53_v8 = vsel %vm4_vm0, %v175_v7, %v174_v6  ;;  %v32_v11 = vsel %vm4_vm0, %v170_v10, %v169_v9  ;;  %v179_v12 = vld [vmem:[%s388_s0 + $0x45] ss:$8 sm:$0xf]   ;;  %v184_v18 = vld [vmem:[%s388_s0 + $0x44] ss:$8 sm:$0xf]  }
   0x6   :  { %v180_v13 = vld [vmem:[%s388_s0 + $0x45] ss:$8 sm:$0xf0]   ;;  %v185_v19 = vld [vmem:[%s388_s0 + $0x44] ss:$8 sm:$0xf0]  }
   0x7   :  { %v177_v14 = vld [vmem:[%s388_s0 + $0x5] ss:$8 sm:$0xf]   ;;  %v74_v16 = vsel %vm4_vm0, %v180_v13, %v179_v12  ;;  %v182_v20 = vld [vmem:[%s388_s0 + $0x4] ss:$8 sm:$0xf]   ;;  %v95_v22 = vsel %vm4_vm0, %v185_v19, %v184_v18 }
   0x8   :  { %54 = vrot.lane.b32.xlu1 %v53_v8, %s209_s14  ;;  %v178_v15 = vld [vmem:[%s388_s0 + $0x5] ss:$8 sm:$0xf0]   ;;  %33 = vrot.lane.b32.xlu0 %v32_v11, %s210_s19  ;;  %v183_v21 = vld [vmem:[%s388_s0 + $0x4] ss:$8 sm:$0xf0]  }
   0x9   :  { %v64_v17 = vsel %vm4_vm0, %v178_v15, %v177_v14  ;;  %s211_s11 = smov 80   ;;  %v85_v23 = vsel %vm4_vm0, %v183_v21, %v182_v20  ;;  %v189_v24 = vld [vmem:[%s388_s0 + $0x43] ss:$8 sm:$0xf]   ;;  %s212_s20 = smov 64   ;;  %vm67_vm4 = vcmask 786048  }
   0xa   :  { %v190_v25 = vld [vmem:[%s388_s0 + $0x43] ss:$8 sm:$0xf0]   ;;  %v194_v28 = vld [vmem:[%s388_s0 + $0x42] ss:$8 sm:$0xf]  }
   0xb   :  { %v187_v26 = vld [vmem:[%s388_s0 + $0x3] ss:$8 sm:$0xf]   ;;  %v195_v29 = vld [vmem:[%s388_s0 + $0x42] ss:$8 sm:$0xf0]   ;;  %v116_v30 = vsel %vm4_vm0, %v190_v25, %v189_v24 }
   0xc   :  { %75 = vrot.lane.b32.xlu1 %v74_v16, %s211_s11  ;;  %65 = vrot.lane.b32.xlu0 %v64_v17, %s211_s11  ;;  %v188_v27 = vld [vmem:[%s388_s0 + $0x3] ss:$8 sm:$0xf0]   ;;  %v192_v31 = vld [vmem:[%s388_s0 + $0x2] ss:$8 sm:$0xf]   ;;  %v137_v40 = vsel %vm4_vm0, %v195_v29, %v194_v28 }
   0xd   :  { %v2_v32 = vld [vmem:[%s388_s0] ss:$8 sm:$0xf]   ;;  %v106_v33 = vsel %vm4_vm0, %v188_v27, %v187_v26  ;;  %v193_v36 = vld [vmem:[%s388_s0 + $0x2] ss:$8 sm:$0xf0]  }
   0xe   :  { %v3_v34 = vld [vmem:[%s388_s0] ss:$8 sm:$0xf0]   ;;  %s213_s8 = smov 48   ;;  %v127_v41 = vsel %vm4_vm0, %v193_v36, %v192_v31  ;;  %s215_s21 = smov 16   ;;  %vm88_vm5 = vcmask 654848  }
   0xf   :  { %v164_v35 = vld [vmem:[%s388_s0 + $0x40] ss:$8 sm:$0xf]   ;;  %v5_v37 = vsel %vm4_vm0, %v3_v34, %v2_v32  ;;  %v199_v42 = vld [vmem:[%s388_s0 + $0x41] ss:$8 sm:$0xf]  }
  0x10   :  { %96 = vrot.lane.b32.xlu1 %v95_v22, %s212_s20  ;;  %86 = vrot.lane.b32.xlu0 %v85_v23, %s212_s20  ;;  %v165_v38 = vld [vmem:[%s388_s0 + $0x40] ss:$8 sm:$0xf0]   ;;  %7 = vst.msk [vmem:[%s389_s1] sm:$0xff] %vm6_vm1, %v5_v37   ;;  %vm109_vm6 = vcmask 523648   ;;  %vm130_vm7 = vcmask 392448  }
  0x11   :  { %v13_v39 = vsel %vm4_vm0, %v165_v38, %v164_v35  ;;  %v200_v43 = vld [vmem:[%s388_s0 + $0x41] ss:$8 sm:$0xf0]   ;;  %vm151_vm8 = vcmask 261248  }
  0x12   :  { %166 = vst.msk [vmem:[%s389_s1 + $0x8] sm:$0xff] %vm6_vm1, %v13_v39   ;;  %v197_v44 = vld [vmem:[%s388_s0 + $0x1] ss:$8 sm:$0xf]   ;;  %v158_v46 = vsel %vm4_vm0, %v200_v43, %v199_v42 }
  0x13   :  { %v198_v45 = vld [vmem:[%s388_s0 + $0x1] ss:$8 sm:$0xf0]   ;;  %s214_s0 = smov 32  }
  0x14   :  { %117 = vrot.lane.b32.xlu1 %v116_v30, %s213_s8  ;;  %107 = vrot.lane.b32.xlu0 %v106_v33, %s213_s8  ;;  %v148_v47 = vsel %vm4_vm0, %v198_v45, %v197_v44 }
  0x18   :  { %138 = vrot.lane.b32.xlu1 %v137_v40, %s214_s0  ;;  %128 = vrot.lane.b32.xlu0 %v127_v41, %s214_s0 }
  0x1c   :  { %159 = vrot.lane.b32.xlu1 %v158_v46, %s215_s21  ;;  %149 = vrot.lane.b32.xlu0 %v148_v47, %s215_s21 }
  0x76   :  { %v45_v48 = vpop.permute.xlu1 %44   ;;  %v24_v49 = vpop.permute.xlu0 %23  }
  0x77   :  { %26 = vst.msk [vmem:[%s389_s1] sm:$0xff] %vm25_vm2, %v24_v49  }
  0x78   :  { %47 = vst.msk [vmem:[%s389_s1] sm:$0xff] %vm46_vm3, %v45_v48  }
  0x7a   :  { %v55_v50 = vpop.permute.xlu1 %54   ;;  %v34_v51 = vpop.permute.xlu0 %33  }
  0x7b   :  { %171 = vst.msk [vmem:[%s389_s1 + $0x8] sm:$0xff] %vm25_vm2, %v34_v51  }
  0x7c   :  { %176 = vst.msk [vmem:[%s389_s1 + $0x8] sm:$0xff] %vm46_vm3, %v55_v50  }
  0x7e   :  { %v76_v52 = vpop.permute.xlu1 %75   ;;  %v66_v53 = vpop.permute.xlu0 %65  }
  0x7f   :  { %181 = vst.msk [vmem:[%s389_s1 + $0x8] sm:$0xff] %vm67_vm4, %v76_v52   ;;  %68 = vst.msk [vmem:[%s389_s1] sm:$0xff] %vm67_vm4, %v66_v53  }
  0x82   :  { %v97_v54 = vpop.permute.xlu1 %96   ;;  %v87_v55 = vpop.permute.xlu0 %86  }
  0x83   :  { %186 = vst.msk [vmem:[%s389_s1 + $0x8] sm:$0xff] %vm88_vm5, %v97_v54   ;;  %89 = vst.msk [vmem:[%s389_s1] sm:$0xff] %vm88_vm5, %v87_v55  }
  0x86   :  { %v118_v56 = vpop.permute.xlu1 %117   ;;  %v108_v57 = vpop.permute.xlu0 %107  }
  0x87   :  { %191 = vst.msk [vmem:[%s389_s1 + $0x8] sm:$0xff] %vm109_vm6, %v118_v56   ;;  %110 = vst.msk [vmem:[%s389_s1] sm:$0xff] %vm109_vm6, %v108_v57  }
  0x8a   :  { %v139_v58 = vpop.permute.xlu1 %138   ;;  %v129_v59 = vpop.permute.xlu0 %128  }
  0x8b   :  { %196 = vst.msk [vmem:[%s389_s1 + $0x8] sm:$0xff] %vm130_vm7, %v139_v58   ;;  %131 = vst.msk [vmem:[%s389_s1] sm:$0xff] %vm130_vm7, %v129_v59  }
  0x8e   :  { %v160_v60 = vpop.permute.xlu1 %159   ;;  %v150_v61 = vpop.permute.xlu0 %149  }
  0x8f   :  { %201 = vst.msk [vmem:[%s389_s1 + $0x8] sm:$0xff] %vm151_vm8, %v160_v60   ;;  %152 = vst.msk [vmem:[%s389_s1] sm:$0xff] %vm151_vm8, %v150_v61  }

// kernel: fast_guided_filter_attention.1
= control target key start
LH: loop header
LB: loop body
LE: loop exit
PB: predicated region body
PF: predicated region fallthrough
CT: control target
= control target key end

     0   :  { %s1053_s17 = smov 1   ;;  %s1054_s20 = smov 127   ;;  %v1057_v20 = vmov 0.0   ;;  %v54_v29 = vlaneseq  ;;  %vm403_vm12 = vcmask 130048   ;;  %s1847_s3 = inlined_call_operand.vmem [shape: f32[16,128], index: 3, kind: input, shape index: {}]   ;;  %s1848_s1 = inlined_call_operand.vmem [shape: f32[16,128], index: 1, kind: input, shape index: {}]   ;;  %s1849_s2 = inlined_call_operand.vmem [shape: f32[16,128], index: 2, kind: input, shape index: {}]   ;;  %s1850_s6 = inlined_call_operand.vmem [shape: f32[16,16], index: 6, kind: input, shape index: {}]   ;;  %s1851_s8 = inlined_call_operand.vmem [shape: f32[128,256], index: 8, kind: input, shape index: {}]   ;;  %s1852_s5 = inlined_call_operand.vmem [shape: f32[16,128], index: 5, kind: input, shape index: {}]   ;;  %s1853_s0 = inlined_call_operand.<no memory space> [shape: f32[1,1], index: 0, kind: input, shape index: {}]   ;;  %s1854_s7 = inlined_call_operand.vmem [shape: f32[32,16], index: 7, kind: input, shape index: {}]   ;;  %s1855_s4 = inlined_call_operand.vmem [shape: f32[32,256], index: 4, kind: input, shape index: {}]   ;;  %s1856_s9 = inlined_call_operand.vmem [shape: f32[32,256], index: 9, kind: output, shape index: {}]  }
   0x1   :  { %v37_v0 = vld [vmem:[%s1847_s3] sm:$0xff]  ;;  %v38_v1 = vld [vmem:[%s1847_s3 + $0x8] sm:$0xff]  ;;  %s1056_s21 = smov 126   ;;  %474 = vmatprep.mubr.f32.mxu0 %v1057_v20  ;;  %551 = vmatprep.mubr.f32.mxu1 %v1057_v20 }
   0x2   :  { %v39_v2 = vand.u32 2147483647, %v37_v0  ;;  %v40_v3 = vand.u32 2147483647, %v38_v1  ;;  %v33_v4 = vld [vmem:[%s1848_s1] sm:$0xff]  ;;  %v34_v7 = vld [vmem:[%s1848_s1 + $0x8] sm:$0xff] }
   0x3   :  { %v35_v12 = vld [vmem:[%s1849_s2] sm:$0xff]  ;;  %v36_v13 = vld [vmem:[%s1849_s2 + $0x8] sm:$0xff]  ;;  %s1055_s2 = smov 2   ;;  %v1276_v32 = vand.u32 127, %v54_v29 }
   0x4   :  { %v1117_v5 = vadd.f32 1e-12, %v39_v2  ;;  %v1119_v6 = vadd.f32 1e-12, %v40_v3 }
   0x5   :  { %v56_v35 = vadd.s32 128, %v1276_v32  ;;  %vm163_vm0 = vcmp.lt.s32.totalorder %v1276_v32, 1  ;;  %v1289_v41 = vand.u32 15, %v1276_v32  ;;  %vm230_vm1 = vcmp.lt.s32.totalorder %v1276_v32, 127 }
   0x6   :  { %139 = vrot.lane.b32.xlu0 %v1117_v5, %s1053_s17  ;;  %v1127_v8 = vmul.f32 %v1117_v5, %v33_v4  ;;  %v1132_v9 = vmul.f32 %v1119_v6, %v34_v7  ;;  %v1159_v14 = vmul.f32 %v1117_v5, %v35_v12  ;;  %v1164_v15 = vmul.f32 %v1119_v6, %v36_v13 }
   0x7   :  { %v72_v38 = vand.u32 15, %v56_v35  ;;  %vm297_vm4 = vcmp.lt.s32.totalorder %v1276_v32, 2  ;;  %vm133_vm5 = vcmp.ge.s32.totalorder %v1289_v41, 1  ;;  %vm200_vm6 = vcmp.le.s32.totalorder %v1289_v41, 14 }
   0x8   :  { %143 = vrot.lane.b32.xlu1 %v1127_v8, %s1053_s17  ;;  %v1138_v10 = vmul.f32 %v1127_v8, %v1117_v5  ;;  %v1144_v11 = vmul.f32 %v1132_v9, %v1119_v6  ;;  %v1198_v16 = vmul.f32 %v1127_v8, %v1127_v8  ;;  %v1204_v17 = vmul.f32 %v1132_v9, %v1132_v9 }
   0x9   :  { %v1210_v18 = vmul.f32 %v1159_v14, %v1127_v8  ;;  %v1216_v19 = vmul.f32 %v1164_v15, %v1132_v9  ;;  %vm134_vm2 = vcmp.ge.s32.totalorder %v72_v38, 1  ;;  %vm201_vm3 = vcmp.le.s32.totalorder %v72_v38, 14 }
   0xa   :  { %141 = vrot.lane.b32.xlu0 %v1119_v6, %s1053_s17  ;;  %vm268_vm7 = vcmp.ge.s32.totalorder %v72_v38, 2  ;;  %vm267_vm8 = vcmp.ge.s32.totalorder %v1289_v41, 2  ;;  %vm364_vm9 = vcmp.lt.s32.totalorder %v1276_v32, 126  ;;  %vm335_vm10 = vcmp.le.s32.totalorder %v72_v38, 13 }
   0xb   :  { %vm334_vm11 = vcmp.le.s32.totalorder %v1289_v41, 13  ;;  %v60_v41 = vadd.s32 640, %v1276_v32 }
   0xc   :  { %145 = vrot.lane.b32.xlu1 %v1132_v9, %s1053_s17 }
   0xe   :  { %159 = vrot.lane.b32.xlu0 %v1138_v10, %s1053_s17 }
  0x10   :  { %161 = vrot.lane.b32.xlu1 %v1144_v11, %s1053_s17 }
  0x12   :  { %210 = vrot.lane.b32.xlu0 %v1127_v8, %s1054_s20 }
  0x14   :  { %212 = vrot.lane.b32.xlu1 %v1132_v9, %s1054_s20 }
  0x16   :  { %214 = vrot.lane.b32.xlu0 %v1159_v14, %s1054_s20 }
  0x18   :  { %216 = vrot.lane.b32.xlu1 %v1164_v15, %s1054_s20 }
  0x1a   :  { %206 = vrot.lane.b32.xlu0 %v1117_v5, %s1054_s20 }
  0x1c   :  { %208 = vrot.lane.b32.xlu1 %v1119_v6, %s1054_s20 }
  0x1e   :  { %273 = vrot.lane.b32.xlu0 %v1117_v5, %s1055_s2 }
  0x20   :  { %275 = vrot.lane.b32.xlu1 %v1119_v6, %s1055_s2 }
  0x22   :  { %277 = vrot.lane.b32.xlu0 %v1127_v8, %s1055_s2 }
  0x24   :  { %279 = vrot.lane.b32.xlu1 %v1132_v9, %s1055_s2 }
  0x26   :  { %293 = vrot.lane.b32.xlu0 %v1138_v10, %s1055_s2 }
  0x28   :  { %295 = vrot.lane.b32.xlu1 %v1144_v11, %s1055_s2 }
  0x2a   :  { %344 = vrot.lane.b32.xlu0 %v1127_v8, %s1056_s21 }
  0x2c   :  { %346 = vrot.lane.b32.xlu1 %v1132_v9, %s1056_s21 }
  0x2e   :  { %348 = vrot.lane.b32.xlu0 %v1159_v14, %s1056_s21 }
  0x30   :  { %350 = vrot.lane.b32.xlu1 %v1164_v15, %s1056_s21 }
  0x32   :  { %340 = vrot.lane.b32.xlu0 %v1117_v5, %s1056_s21 }
  0x34   :  { %342 = vrot.lane.b32.xlu1 %v1119_v6, %s1056_s21 }
  0x36   :  { %155 = vrot.lane.b32.xlu0 %v1198_v16, %s1053_s17 }
  0x38   :  { %157 = vrot.lane.b32.xlu1 %v1204_v17, %s1053_s17 }
  0x3a   :  { %151 = vrot.lane.b32.xlu0 %v1210_v18, %s1053_s17 }
  0x3c   :  { %153 = vrot.lane.b32.xlu1 %v1216_v19, %s1053_s17 }
  0x3e   :  { %226 = vrot.lane.b32.xlu0 %v1138_v10, %s1054_s20 }
  0x40   :  { %228 = vrot.lane.b32.xlu1 %v1144_v11, %s1054_s20 }
  0x42   :  { %222 = vrot.lane.b32.xlu0 %v1198_v16, %s1054_s20 }
  0x44   :  { %224 = vrot.lane.b32.xlu1 %v1204_v17, %s1054_s20 }
  0x46   :  { %289 = vrot.lane.b32.xlu0 %v1198_v16, %s1055_s2 }
  0x48   :  { %291 = vrot.lane.b32.xlu1 %v1204_v17, %s1055_s2 }
  0x4a   :  { %285 = vrot.lane.b32.xlu0 %v1210_v18, %s1055_s2 }
  0x4c   :  { %287 = vrot.lane.b32.xlu1 %v1216_v19, %s1055_s2 }
  0x4e   :  { %360 = vrot.lane.b32.xlu0 %v1138_v10, %s1056_s21 }
  0x50   :  { %362 = vrot.lane.b32.xlu1 %v1144_v11, %s1056_s21 }
  0x52   :  { %356 = vrot.lane.b32.xlu0 %v1198_v16, %s1056_s21 }
  0x54   :  { %358 = vrot.lane.b32.xlu1 %v1204_v17, %s1056_s21 }
  0x56   :  { %147 = vrot.lane.b32.xlu0 %v1159_v14, %s1053_s17 }
  0x58   :  { %149 = vrot.lane.b32.xlu1 %v1164_v15, %s1053_s17 }
  0x5a   :  { %218 = vrot.lane.b32.xlu0 %v1210_v18, %s1054_s20 }
  0x5c   :  { %220 = vrot.lane.b32.xlu1 %v1216_v19, %s1054_s20 }
  0x5e   :  { %281 = vrot.lane.b32.xlu0 %v1159_v14, %s1055_s2 }
  0x60   :  { %283 = vrot.lane.b32.xlu1 %v1164_v15, %s1055_s2 }
  0x62   :  { %352 = vrot.lane.b32.xlu0 %v1210_v18, %s1056_s21 }
  0x64   :  { %354 = vrot.lane.b32.xlu1 %v1216_v19, %s1056_s21 }
  0x78   :  { %v140_v21 = vpop.permute.xlu0 %139 }
  0x7a   :  { %v1264_v22 = vpop.permute.xlu1 %143 }
  0x7b   :  { %v172_v42 = vsel %vm163_vm0, %v140_v21, %v1264_v22 }
  0x7c   :  { %v142_v23 = vpop.permute.xlu0 %141  ;;  %v177_v48 = vsel %vm134_vm2, %v172_v42, 0.0 }
  0x7d   :  { %v189_v57 = vadd.f32 %v177_v48, %v1127_v8 }
  0x7e   :  { %v1266_v24 = vpop.permute.xlu1 %145 }
  0x7f   :  { %v173_v43 = vsel %vm163_vm0, %v142_v23, %v1266_v24 }
  0x80   :  { %v1268_v25 = vpop.permute.xlu0 %159  ;;  %v183_v49 = vsel %vm134_vm2, %v173_v43, 0.0 }
  0x81   :  { %v174_v50 = vsel %vm163_vm0, %v1268_v25, %v140_v21  ;;  %v195_v58 = vadd.f32 %v183_v49, %v1132_v9 }
  0x82   :  { %v1270_v26 = vpop.permute.xlu1 %161  ;;  %v176_v61 = vsel %vm133_vm5, %v174_v50, 0.0 }
  0x83   :  { %v175_v51 = vsel %vm163_vm0, %v1270_v26, %v142_v23  ;;  %v188_v13 = vadd.f32 %v176_v61, %v1117_v5 }
  0x84   :  { %v211_v27 = vpop.permute.xlu0 %210  ;;  %v182_v62 = vsel %vm133_vm5, %v175_v51, 0.0 }
  0x86   :  { %v213_v28 = vpop.permute.xlu1 %212 }
  0x88   :  { %v1272_v30 = vpop.permute.xlu0 %214 }
  0x89   :  { %v237_v45 = vsel %vm230_vm1, %v211_v27, %v1272_v30 }
  0x8a   :  { %v1274_v31 = vpop.permute.xlu1 %216  ;;  %v244_v53 = vsel %vm201_vm3, %v237_v45, 0.0 }
  0x8b   :  { %v238_v46 = vsel %vm230_vm1, %v213_v28, %v1274_v31  ;;  %v256_v0 = vadd.f32 %v244_v53, %v189_v57 }
  0x8c   :  { %v1278_v33 = vpop.permute.xlu0 %206  ;;  %v250_v54 = vsel %vm201_vm3, %v238_v46, 0.0 }
  0x8d   :  { %v239_v59 = vsel %vm230_vm1, %v1278_v33, %v211_v27  ;;  %v262_v1 = vadd.f32 %v250_v54, %v195_v58 }
  0x8e   :  { %v1280_v34 = vpop.permute.xlu1 %208  ;;  %v243_v7 = vsel %vm200_vm6, %v239_v59, 0.0 }
  0x8f   :  { %v240_v63 = vsel %vm230_vm1, %v1280_v34, %v213_v28  ;;  %v194_v28 = vadd.f32 %v182_v62, %v1119_v6 }
  0x90   :  { %v274_v36 = vpop.permute.xlu0 %273  ;;  %v249_v21 = vsel %vm200_vm6, %v240_v63, 0.0  ;;  %v1387_v63 = vld [vmem:[%s1850_s6] sm:$0xff] }
  0x91   :  { %v261_v46 = vadd.f32 %v249_v21, %v194_v28 }
  0x92   :  { %v276_v37 = vpop.permute.xlu1 %275 }
  0x94   :  { %v1283_v39 = vpop.permute.xlu0 %277 }
  0x95   :  { %v306_v55 = vsel %vm297_vm4, %v274_v36, %v1283_v39 }
  0x96   :  { %v1286_v40 = vpop.permute.xlu1 %279  ;;  %v311_v2 = vsel %vm268_vm7, %v306_v55, 0.0 }
  0x97   :  { %v307_v56 = vsel %vm297_vm4, %v276_v37, %v1286_v40  ;;  %v323_v29 = vadd.f32 %v311_v2, %v256_v0  ;;  %v59_v2 = vadd.s32 512, %v1276_v32 }
  0x98   :  { %v1298_v44 = vpop.permute.xlu0 %293  ;;  %v317_v3 = vsel %vm268_vm7, %v307_v56, 0.0 }
  0x99   :  { %v308_v8 = vsel %vm297_vm4, %v1298_v44, %v274_v36  ;;  %v329_v35 = vadd.f32 %v317_v3, %v262_v1  ;;  %v1398_v1 = vld [vmem:[%s1850_s6 + $0x8] sm:$0xff] }
  0x9a   :  { %v1307_v47 = vpop.permute.xlu1 %295  ;;  %v310_v5 = vsel %vm267_vm8, %v308_v8, 0.0 }
  0x9b   :  { %v309_v9 = vsel %vm297_vm4, %v1307_v47, %v276_v37  ;;  %v255_v37 = vadd.f32 %v243_v7, %v188_v13  ;;  %v100_v7 = vand.u32 15, %v60_v41 }
  0x9c   :  { %v345_v52 = vpop.permute.xlu0 %344  ;;  %v316_v42 = vsel %vm267_vm8, %v309_v9, 0.0  ;;  %v1406_v9 = vand.u32 15, %v59_v2  ;;  %v58_v2 = vadd.s32 384, %v1276_v32 }
  0x9d   :  { %v322_v53 = vadd.f32 %v310_v5, %v255_v37  ;;  %v328_v54 = vadd.f32 %v316_v42, %v261_v46  ;;  %vm138_vm13 = vcmp.ge.s32.totalorder %v100_v7, 1  ;;  %vm205_vm15 = vcmp.le.s32.totalorder %v100_v7, 14 }
  0x9e   :  { %v347_v60 = vpop.permute.xlu1 %346  ;;  %vm137_vm14 = vcmp.ge.s32.totalorder %v1406_v9, 1  ;;  %vm204_vm2 = vcmp.le.s32.totalorder %v1406_v9, 14  ;;  %vm272_vm3 = vcmp.ge.s32.totalorder %v100_v7, 2  ;;  %vm271_vm5 = vcmp.ge.s32.totalorder %v1406_v9, 2 }
  0x9f   :  { %vm339_vm6 = vcmp.le.s32.totalorder %v100_v7, 13  ;;  %vm338_vm7 = vcmp.le.s32.totalorder %v1406_v9, 13 }
  0xa0   :  { %v1339_v4 = vpop.permute.xlu0 %348 }
  0xa1   :  { %v371_v12 = vsel %vm364_vm9, %v345_v52, %v1339_v4 }
  0xa2   :  { %v378_v23 = vsel %vm335_vm10, %v371_v12, 0.0  ;;  %v1356_v27 = vpop.permute.xlu1 %350 }
  0xa3   :  { %v372_v36 = vsel %vm364_vm9, %v347_v60, %v1356_v27  ;;  %v390_v48 = vadd.f32 %v378_v23, %v323_v29 }
  0xa4   :  { %v384_v43 = vsel %vm335_vm10, %v372_v36, 0.0  ;;  %v1368_v45 = vpop.permute.xlu0 %340 }
  0xa5   :  { %v373_v6 = vsel %vm364_vm9, %v1368_v45, %v345_v52  ;;  %v396_v49 = vadd.f32 %v384_v43, %v329_v35 }
  0xa6   :  { %v377_v50 = vsel %vm334_vm11, %v373_v6, 0.0  ;;  %v1375_v51 = vpop.permute.xlu1 %342 }
  0xa7   :  { %v374_v38 = vsel %vm364_vm9, %v1375_v51, %v347_v60  ;;  %v976_v55 = vpack.c.bf16 %v396_v49, %v390_v48  ;;  %v389_v52 = vadd.f32 %v377_v50, %v322_v53 }
  0xa8   :  { %v383_v56 = vsel %vm334_vm11, %v374_v38, 0.0  ;;  %v156_v57 = vpop.permute.xlu0 %155 }
  0xa9   :  { %977 = vmatprep.subr.bf16.mxu0 %v976_v55  ;;  %v395_v58 = vadd.f32 %v383_v56, %v328_v54  ;;  %v164_v13 = vsel %vm163_vm0, %v156_v57, %v1268_v25 }
  0xaa   :  { %v158_v59 = vpop.permute.xlu1 %157  ;;  %v181_v36 = vsel %vm138_vm13, %v164_v13, 0.0 }
  0xab   :  { %v978_v61 = vpack.c.bf16 %v395_v58, %v389_v52  ;;  %v165_v21 = vsel %vm163_vm0, %v158_v59, %v1270_v26  ;;  %v193_v46 = vadd.f32 %v181_v36, %v1138_v10 }
  0xac   :  { %v1382_v62 = vpop.permute.xlu0 %151  ;;  %v187_v37 = vsel %vm138_vm13, %v165_v21, 0.0 }
  0xad   :  { %979 = vmatpush1.bf16.msra.mxu0 %v978_v61  ;;  %v166_v25 = vsel %vm163_vm0, %v1382_v62, %v156_v57  ;;  %v199_v6 = vadd.f32 %v187_v37, %v1144_v11  ;;  %v57_v11 = vadd.s32 256, %v1276_v32  ;;  %v786_v32 = vld [vmem:[%s1851_s8 + $0x8] sm:$0xff] }
  0xae   :  { %v1389_v60 = vpop.permute.xlu1 %153  ;;  %v180_v50 = vsel %vm137_vm14, %v166_v25, 0.0 }
  0xaf   :  { %v167_v26 = vsel %vm163_vm0, %v1389_v60, %v158_v59  ;;  %v192_v59 = vadd.f32 %v180_v50, %v1198_v16 }
  0xb0   :  { %v227_v0 = vpop.permute.xlu0 %226  ;;  %966 = vmatmul.mubr.msk.f32.vlgmr.msra.gmra.mrb[0].mxu0 %vm403_vm12, %v1387_v63 }
  0xb1   :  { %480 = vmatprep.mubr.f32.mxu0 %v1057_v20  ;;  %v241_v28 = vsel %vm230_vm1, %v227_v0, %v1278_v33 }
  0xb2   :  { %v229_v3 = vpop.permute.xlu1 %228 }
  0xb3   :  { %v242_v29 = vsel %vm230_vm1, %v229_v3, %v1280_v34  ;;  %v248_v34 = vsel %vm205_vm15, %v241_v28, 0.0 }
  0xb4   :  { %v1401_v8 = vpop.permute.xlu0 %222  ;;  %967 = vmatmul.mubr.msk.f32.gmra.mrb[2].mxu0 %vm403_vm12, %v1398_v1  ;;  %v254_v5 = vsel %vm205_vm15, %v242_v29, 0.0 }
  0xb5   :  { %628 = vmatprep.mubr.f32.mxu0 %v1057_v20  ;;  %v231_v48 = vsel %vm230_vm1, %v1401_v8, %v227_v0  ;;  %v266_v53 = vadd.f32 %v254_v5, %v199_v6  ;;  %v1493_v5 = vand.u32 15, %v58_v2 }
  0xb6   :  { %v1408_v12 = vpop.permute.xlu1 %224  ;;  %v247_v56 = vsel %vm204_vm2, %v231_v48, 0.0 }
  0xb7   :  { %v232_v10 = vsel %vm230_vm1, %v1408_v12, %v229_v3  ;;  %v259_v28 = vadd.f32 %v247_v56, %v192_v59  ;;  %vm136_vm10 = vcmp.ge.s32.totalorder %v1493_v5, 1  ;;  %vm203_vm13 = vcmp.le.s32.totalorder %v1493_v5, 14 }
  0xb8   :  { %v290_v23 = vpop.permute.xlu0 %289  ;;  %v253_v61 = vsel %vm204_vm2, %v232_v10, 0.0  ;;  %vm337_vm2 = vcmp.le.s32.totalorder %v1493_v5, 13 }
  0xb9   :  { %v298_v42 = vsel %vm297_vm4, %v290_v23, %v1298_v44  ;;  %v186_v44 = vsel %vm137_vm14, %v167_v26, 0.0  ;;  %vm270_vm14 = vcmp.ge.s32.totalorder %v1493_v5, 2  ;;  %v792_v5 = vld [vmem:[%s1851_s8 + $0x38] sm:$0xff] }
  0xba   :  { %v292_v35 = vpop.permute.xlu1 %291  ;;  %v315_v54 = vsel %vm272_vm3, %v298_v42, 0.0  ;;  %v198_v3 = vadd.f32 %v186_v44, %v1204_v17 }
  0xbb   :  { %v299_v43 = vsel %vm297_vm4, %v292_v35, %v1307_v47  ;;  %v260_v47 = vadd.f32 %v248_v34, %v193_v46  ;;  %v1491_v34 = vand.u32 15, %v57_v11 }
  0xbc   :  { %v1431_v33 = vpop.permute.xlu0 %285  ;;  %v321_v38 = vsel %vm272_vm3, %v299_v43, 0.0  ;;  %v265_v36 = vadd.f32 %v253_v61, %v198_v3 }
  0xbd   :  { %v300_v57 = vsel %vm297_vm4, %v1431_v33, %v290_v23  ;;  %v327_v13 = vadd.f32 %v315_v54, %v260_v47  ;;  %v333_v21 = vadd.f32 %v321_v38, %v266_v53  ;;  %vm135_vm8 = vcmp.ge.s32.totalorder %v1491_v34, 1 }
  0xbe   :  { %v1444_v49 = vpop.permute.xlu1 %287  ;;  %v314_v16 = vsel %vm271_vm5, %v300_v57, 0.0  ;;  %vm202_vm11 = vcmp.le.s32.totalorder %v1491_v34, 14  ;;  %vm336_vm15 = vcmp.le.s32.totalorder %v1491_v34, 13 }
  0xbf   :  { %v301_v52 = vsel %vm297_vm4, %v1444_v49, %v292_v35  ;;  %v326_v7 = vadd.f32 %v314_v16, %v259_v28 }
  0xc0   :  { %v361_v55 = vpop.permute.xlu0 %360 }
  0xc1   :  { %v375_v58 = vsel %vm364_vm9, %v361_v55, %v1368_v45  ;;  %v320_v45 = vsel %vm271_vm5, %v301_v52, 0.0 }
  0xc2   :  { %v382_v41 = vsel %vm339_vm6, %v375_v58, 0.0  ;;  %v363_v0 = vpop.permute.xlu1 %362  ;;  %v332_v42 = vadd.f32 %v320_v45, %v265_v36 }
  0xc3   :  { %v376_v23 = vsel %vm364_vm9, %v363_v0, %v1375_v51  ;;  %v394_v37 = vadd.f32 %v382_v41, %v327_v13 }
  0xc4   :  { %v388_v29 = vsel %vm339_vm6, %v376_v23, 0.0  ;;  %v1482_v35 = vpop.permute.xlu0 %356 }
  0xc5   :  { %v400_v17 = vadd.f32 %v388_v29, %v333_v21  ;;  %v365_v25 = vsel %vm364_vm9, %v1482_v35, %v361_v55 }
  0xc6   :  { %v381_v51 = vsel %vm338_vm7, %v365_v25, 0.0  ;;  %v1489_v26 = vpop.permute.xlu1 %358 }
  0xc7   :  { %v366_v43 = vsel %vm364_vm9, %v1489_v26, %v363_v0  ;;  %v984_v46 = vpack.c.bf16 %v400_v17, %v394_v37  ;;  %v393_v50 = vadd.f32 %v381_v51, %v326_v7 }
  0xc8   :  { %v387_v6 = vsel %vm338_vm7, %v366_v43, 0.0  ;;  %v148_v48 = vpop.permute.xlu0 %147 }
  0xc9   :  { %v399_v44 = vadd.f32 %v387_v6, %v332_v42  ;;  %985 = vmatprep.subr.bf16.mxu0 %v984_v46  ;;  %v168_v10 = vsel %vm163_vm0, %v148_v48, %v1382_v62  ;;  %v170_v11 = vsel %vm163_vm0, %v1264_v22, %v148_v48 }
  0xca   :  { %v150_v47 = vpop.permute.xlu1 %149  ;;  %v178_v55 = vsel %vm135_vm8, %v170_v11, 0.0  ;;  %v179_v62 = vsel %vm136_vm10, %v168_v10, 0.0 }
  0xcb   :  { %v986_v53 = vpack.c.bf16 %v399_v44, %v393_v50  ;;  %v169_v9 = vsel %vm163_vm0, %v150_v47, %v1389_v60  ;;  %v171_v54 = vsel %vm163_vm0, %v1266_v24, %v150_v47  ;;  %vm269_vm0 = vcmp.ge.s32.totalorder %v1491_v34, 2  ;;  %v790_v34 = vld [vmem:[%s1851_s8 + $0x28] sm:$0xff] }
  0xcc   :  { %v219_v38 = vpop.permute.xlu0 %218  ;;  %v184_v56 = vsel %vm135_vm8, %v171_v54, 0.0  ;;  %v185_v57 = vsel %vm136_vm10, %v169_v9, 0.0  ;;  %v191_v58 = vadd.f32 %v179_v62, %v1210_v18  ;;  %v789_v9 = vld [vmem:[%s1851_s8 + $0x20] sm:$0xff]  ;;  %v791_v54 = vld [vmem:[%s1851_s8 + $0x30] sm:$0xff] }
  0xcd   :  { %987 = vmatpush1.bf16.msra.mxu0 %v986_v53  ;;  %v233_v22 = vsel %vm230_vm1, %v219_v38, %v1401_v8  ;;  %v235_v24 = vsel %vm230_vm1, %v1272_v30, %v219_v38  ;;  %v190_v30 = vadd.f32 %v178_v55, %v1159_v14  ;;  %v197_v41 = vadd.f32 %v185_v57, %v1216_v19  ;;  %v794_v38 = vld [vmem:[%s1851_s8 + $0x48] sm:$0xff]  ;;  %v796_v55 = vld [vmem:[%s1851_s8 + $0x58] sm:$0xff] }
  0xce   :  { %v221_v60 = vpop.permute.xlu1 %220  ;;  %v245_v61 = vsel %vm202_vm11, %v235_v24, 0.0  ;;  %v1626_v53 = vpack.c.bf16 %v792_v5, %v790_v34  ;;  %v1642_v62 = vpack.c.bf16 %v791_v54, %v789_v9  ;;  %v793_v24 = vld [vmem:[%s1851_s8 + $0x40] sm:$0xff]  ;;  %v800_v57 = vld [vmem:[%s1851_s8 + $0x78] sm:$0xff] }
  0xcf   :  { %v234_v52 = vsel %vm230_vm1, %v221_v60, %v1408_v12  ;;  %v236_v8 = vsel %vm230_vm1, %v1274_v31, %v221_v60  ;;  %v246_v12 = vsel %vm203_vm13, %v233_v22, 0.0  ;;  %v196_v31 = vadd.f32 %v184_v56, %v1164_v15  ;;  %v795_v60 = vld [vmem:[%s1851_s8 + $0x50] sm:$0xff]  ;;  %v798_v56 = vld [vmem:[%s1851_s8 + $0x68] sm:$0xff] }
  0xd0   :  { %970 = vmatmul.mubr.msk.f32.vlgmr.msra.gmra.mrb[4].mxu0 %vm403_vm12, %v1387_v63  ;;  %v282_v59 = vpop.permute.xlu0 %281  ;;  %v251_v0 = vsel %vm202_vm11, %v236_v8, 0.0  ;;  %v252_v2 = vsel %vm203_vm13, %v234_v52, 0.0  ;;  %v257_v19 = vadd.f32 %v245_v61, %v190_v30  ;;  %v258_v21 = vadd.f32 %v246_v12, %v191_v58  ;;  %v797_v30 = vld [vmem:[%s1851_s8 + $0x60] sm:$0xff]  ;;  %v799_v58 = vld [vmem:[%s1851_s8 + $0x70] sm:$0xff]  ;;  %v804_v61 = vld [vmem:[%s1851_s8 + $0x98] sm:$0xff] }
  0xd1   :  { %v302_v14 = vsel %vm297_vm4, %v282_v59, %v1431_v33  ;;  %v304_v18 = vsel %vm297_vm4, %v1283_v39, %v282_v59  ;;  %634 = vmatprep.mubr.f32.mxu0 %v1057_v20  ;;  %v263_v45 = vadd.f32 %v251_v0, %v196_v31  ;;  %v264_v29 = vadd.f32 %v252_v2, %v197_v41  ;;  %v802_v59 = vld [vmem:[%s1851_s8 + $0x88] sm:$0xff]  ;;  %v803_v31 = vld [vmem:[%s1851_s8 + $0x90] sm:$0xff]  ;;  %v808_v0 = vld [vmem:[%s1851_s8 + $0xb8] sm:$0xff] }
  0xd2   :  { %v284_v3 = vpop.permute.xlu1 %283  ;;  %v312_v33 = vsel %vm269_vm0, %v304_v18, 0.0  ;;  %v313_v13 = vsel %vm270_vm14, %v302_v14, 0.0  ;;  %v1645_v22 = vpack.c.bf16 %v796_v55, %v794_v38  ;;  %v1660_v52 = vpack.c.bf16 %v795_v60, %v793_v24  ;;  %v801_v18 = vld [vmem:[%s1851_s8 + $0x80] sm:$0xff]  ;;  %v806_v41 = vld [vmem:[%s1851_s8 + $0xa8] sm:$0xff] }
  0xd3   :  { %v303_v39 = vsel %vm297_vm4, %v284_v3, %v1444_v49  ;;  %v305_v15 = vsel %vm297_vm4, %v1286_v40, %v284_v3  ;;  %v324_v36 = vadd.f32 %v312_v33, %v257_v19  ;;  %v325_v37 = vadd.f32 %v313_v13, %v258_v21  ;;  %v805_v33 = vld [vmem:[%s1851_s8 + $0xa0] sm:$0xff]  ;;  %v807_v13 = vld [vmem:[%s1851_s8 + $0xb0] sm:$0xff] }
  0xd4   :  { %v318_v23 = vsel %vm269_vm0, %v305_v15, 0.0  ;;  %v319_v28 = vsel %vm270_vm14, %v303_v39, 0.0  ;;  %971 = vmatmul.mubr.msk.f32.gmra.mrb[6].mxu0 %vm403_vm12, %v1398_v1  ;;  %v353_v16 = vpop.permute.xlu0 %352  ;;  %v1663_v8 = vpack.c.bf16 %v800_v57, %v798_v56  ;;  %v1678_v12 = vpack.c.bf16 %v799_v58, %v797_v30  ;;  %v810_v39 = vld [vmem:[%s1851_s8 + $0xc8] sm:$0xff]  ;;  %v812_v15 = vld [vmem:[%s1851_s8 + $0xd8] sm:$0xff] }
  0xd5   :  { %v367_v49 = vsel %vm364_vm9, %v353_v16, %v1482_v35  ;;  %v369_v40 = vsel %vm364_vm9, %v1339_v4, %v353_v16  ;;  %881 = vmatprep.mubr.f32.mxu0 %v1057_v20  ;;  %v330_v7 = vadd.f32 %v318_v23, %v263_v45  ;;  %v331_v42 = vadd.f32 %v319_v28, %v264_v29  ;;  %v809_v23 = vld [vmem:[%s1851_s8 + $0xc0] sm:$0xff]  ;;  %v811_v28 = vld [vmem:[%s1851_s8 + $0xd0] sm:$0xff]  ;;  %v814_v16 = vld [vmem:[%s1851_s8 + $0xe8] sm:$0xff] }
  0xd6   :  { %v379_v17 = vsel %vm336_vm15, %v369_v40, 0.0  ;;  %v380_v25 = vsel %vm337_vm2, %v367_v49, 0.0  ;;  %v355_v51 = vpop.permute.xlu1 %354  ;;  %v1681_v14 = vpack.c.bf16 %v804_v61, %v802_v59  ;;  %v1696_v2 = vpack.c.bf16 %v803_v31, %v801_v18  ;;  %v816_v45 = vld [vmem:[%s1851_s8 + $0xf8] sm:$0xff]  ;;  %v813_v40 = vld [vmem:[%s1851_s8 + $0xe0] sm:$0xff] }
  0xd7   :  { %v368_v35 = vsel %vm364_vm9, %v355_v51, %v1489_v26  ;;  %v370_v4 = vsel %vm364_vm9, %v1356_v27, %v355_v51  ;;  %v392_v6 = vadd.f32 %v380_v25, %v325_v37  ;;  %v391_v50 = vadd.f32 %v379_v17, %v324_v36  ;;  %v788_v27 = vld [vmem:[%s1851_s8 + $0x18] sm:$0xff]  ;;  %v785_v26 = vld [vmem:[%s1851_s8] sm:$0xff]  ;;  %v815_v36 = vld [vmem:[%s1851_s8 + $0xf0] sm:$0xff] }
  0xd8   :  { %v385_v43 = vsel %vm336_vm15, %v370_v4, 0.0  ;;  %v386_v46 = vsel %vm337_vm2, %v368_v35, 0.0  ;;  %v1699_v3 = vpack.c.bf16 %v808_v0, %v806_v41  ;;  %v1714_v19 = vpack.c.bf16 %v807_v13, %v805_v33 }
  0xd9   :  { %v398_v48 = vadd.f32 %v386_v46, %v331_v42  ;;  %v397_v44 = vadd.f32 %v385_v43, %v330_v7  ;;  %v1717_v21 = vpack.c.bf16 %v812_v15, %v810_v39  ;;  %v1732_v29 = vpack.c.bf16 %v811_v28, %v809_v23  ;;  %v641_v42 = vld [vmem:[%s1852_s5] sm:$0xff] }
  0xda   :  { %v1735_v49 = vpack.c.bf16 %v816_v45, %v814_v16  ;;  %v1744_v37 = vpack.c.bf16 %v815_v36, %v813_v40  ;;  %v653_v35 = vstv %s1853_s0 }
  0xdb   :  { %v980_v10 = vpack.c.bf16 %v398_v48, %v392_v6  ;;  %v982_v11 = vpack.c.bf16 %v397_v44, %v391_v50  ;;  %v642_v48 = vld [vmem:[%s1852_s5 + $0x8] sm:$0xff] }
  0xdd   :  { %981 = vmatprep.subr.bf16.mxu1 %v980_v10 }
  0xde   :  { %983 = vmatpush1.bf16.msra.mxu1 %v982_v11 }
  0xe1   :  { %968 = vmatmul.mubr.msk.f32.vlgmr.msra.gmra.mrb[0].mxu1 %vm403_vm12, %v1387_v63  ;;  %v1613_v63 = vpack.c.bf16 %v788_v27, %v786_v32 }
  0xe2   :  { %557 = vmatprep.mubr.f32.mxu1 %v1057_v20 }
  0xe3   :  { %993 = vmatprep.subr.bf16.mxu0 %v1613_v63 }
  0xe5   :  { %969 = vmatmul.mubr.msk.f32.gmra.mrb[2].mxu1 %vm403_vm12, %v1398_v1  ;;  %v787_v1 = vld [vmem:[%s1851_s8 + $0x10] sm:$0xff] }
  0xe6   :  { %760 = vmatprep.mubr.f32.mxu1 %v1057_v20  ;;  %v1624_v47 = vpack.c.bf16 %v787_v1, %v785_v26 }
  0xe8   :  { %995 = vmatpush1.bf16.msra.mxu0 %v1624_v47 }
  0xe9   :  { %997 = vmatprep.subr.bf16.mxu0 %v1626_v53 }
  0xec   :  { %999 = vmatpush1.bf16.msra.mxu0 %v1642_v62 }
  0xed   :  { %1001 = vmatprep.subr.bf16.mxu0 %v1645_v22 }
  0xf0   :  { %1003 = vmatpush1.bf16.msra.mxu0 %v1660_v52 }
  0xf1   :  { %1005 = vmatprep.subr.bf16.mxu0 %v1663_v8 }
  0xf4   :  { %1007 = vmatpush1.bf16.msra.mxu0 %v1678_v12 }
  0xf5   :  { %1009 = vmatprep.subr.bf16.mxu0 %v1681_v14 }
  0xf8   :  { %1011 = vmatpush1.bf16.msra.mxu0 %v1696_v2 }
  0xf9   :  { %1013 = vmatprep.subr.bf16.mxu0 %v1699_v3 }
  0xfc   :  { %1015 = vmatpush1.bf16.msra.mxu0 %v1714_v19 }
  0xfd   :  { %1017 = vmatprep.subr.bf16.mxu0 %v1717_v21 }
 0x100   :  { %1019 = vmatpush1.bf16.msra.mxu0 %v1732_v29 }
 0x101   :  { %1021 = vmatprep.subr.bf16.mxu0 %v1735_v49 }
 0x104   :  { %1023 = vmatpush1.bf16.msra.mxu0 %v1744_v37 }
 0x183   :  { %v476_v17 = vpop.f32.mrb[0].mxu0 }
 0x184   :  { %v478_v25 = vpop.f32.mrb[1].mxu0  ;;  %v643_v24 = vmul.f32 %v641_v42, %v476_v17 }
 0x185   :  { %v645_v46 = vmul.f32 %v641_v42, %v478_v25 }
 0x187   :  { %v482_v51 = vpop.f32.mrb[2].mxu0 }
 0x188   :  { %v484_v7 = vpop.f32.mrb[3].mxu0  ;;  %v644_v30 = vmul.f32 %v642_v48, %v482_v51 }
 0x189   :  { %v646_v32 = vmul.f32 %v642_v48, %v484_v7 }
 0x1a3   :  { %v630_v4 = vpop.f32.mrb[4].mxu0 }
 0x1a4   :  { %v632_v43 = vpop.f32.mrb[5].mxu0  ;;  %v651_v50 = vmul.f32 %v641_v42, %v630_v4  ;;  %v680_v4 = vld [vmem:[%s1854_s7] sm:$0xff] }
 0x1a5   :  { %v654_v6 = vmul.f32 %v653_v35, %v632_v43  ;;  %v681_v43 = vld [vmem:[%s1854_s7 + $0x8] sm:$0xff] }
 0x1a7   :  { %v656_v44 = vmul.f32 %v654_v6, %v645_v46  ;;  %v636_v10 = vpop.f32.mrb[6].mxu0 }
 0x1a8   :  { %v638_v11 = vpop.f32.mrb[7].mxu0  ;;  %v652_v34 = vmul.f32 %v642_v48, %v636_v10 }
 0x1a9   :  { %v658_v27 = vsub.f32 %v651_v50, %v656_v44  ;;  %v655_v26 = vmul.f32 %v653_v35, %v638_v11  ;;  %v933_v50 = vld [vmem:[%s1855_s4 + $0x18] sm:$0xff] }
 0x1ab   :  { %v660_v1 = vand.u32 2147483647, %v658_v27  ;;  %v657_v5 = vmul.f32 %v655_v26, %v646_v32 }
 0x1ad   :  { %v666_v9 = vadd.f32 1e-08, %v660_v1  ;;  %v659_v54 = vsub.f32 %v652_v34, %v657_v5  ;;  %v934_v34 = vld [vmem:[%s1855_s4 + $0x20] sm:$0xff] }
 0x1af   :  { %1045 = vrcp.f32 %v666_v9  ;;  %v661_v38 = vand.u32 2147483647, %v659_v54  ;;  %v935_v9 = vld [vmem:[%s1855_s4 + $0x28] sm:$0xff] }
 0x1b1   :  { %v667_v55 = vadd.f32 1e-08, %v661_v38 }
 0x1b3   :  { %1047 = vrcp.f32 %v667_v55 }
 0x1b4   :  { %v553_v60 = vpop.f32.mrb[0].mxu1  ;;  %1049 = vrcp.f32 %v643_v24 }
 0x1b5   :  { %v647_v56 = vmul.f32 %v641_v42, %v553_v60  ;;  %v555_v57 = vpop.f32.mrb[1].mxu1  ;;  %1051 = vrcp.f32 %v644_v30  ;;  %v936_v30 = vld [vmem:[%s1855_s4 + $0x30] sm:$0xff] }
 0x1b6   :  { %v649_v58 = vmul.f32 %v641_v42, %v555_v57 }
 0x1b7   :  { %v662_v59 = vmul.f32 %v654_v6, %v647_v56 }
 0x1b8   :  { %v559_v61 = vpop.f32.mrb[2].mxu1 }
 0x1b9   :  { %v1046_v18 = vpop.eup %1045  ;;  %v664_v31 = vsub.f32 %v649_v58, %v662_v59  ;;  %v648_v41 = vmul.f32 %v642_v48, %v559_v61  ;;  %v561_v0 = vpop.f32.mrb[3].mxu1  ;;  %v937_v59 = vld [vmem:[%s1855_s4 + $0x38] sm:$0xff] }
 0x1ba   :  { %v650_v33 = vmul.f32 %v642_v48, %v561_v0 }
 0x1bb   :  { %v669_v13 = vmul.f32 %v1046_v18, %v664_v31  ;;  %v663_v39 = vmul.f32 %v655_v26, %v648_v41 }
 0x1bd   :  { %v1048_v15 = vpop.eup %1047  ;;  %v672_v23 = vmul.f32 %v669_v13, %v645_v46  ;;  %v665_v28 = vsub.f32 %v650_v33, %v663_v39 }
 0x1be   :  { %v1050_v40 = vpop.eup %1049 }
 0x1bf   :  { %v671_v16 = vmul.f32 %v1048_v15, %v665_v28  ;;  %v674_v45 = vsub.f32 %v647_v56, %v672_v23  ;;  %v1052_v7 = vpop.eup %1051 }
 0x1c1   :  { %v673_v36 = vmul.f32 %v671_v16, %v646_v32  ;;  %v990_v17 = vpack.c.bf16 %v671_v16, %v669_v13  ;;  %v677_v25 = vmul.f32 %v1050_v40, %v674_v45 }
 0x1c3   :  { %v675_v51 = vsub.f32 %v648_v41, %v673_v36 }
 0x1c5   :  { %v679_v42 = vmul.f32 %v1052_v7, %v675_v51 }
 0x1c7   :  { %v988_v35 = vpack.c.bf16 %v679_v42, %v677_v25 }
 0x1c9   :  { %989 = vmatprep.subr.bf16.mxu1 %v988_v35 }
 0x1ca   :  { %991 = vmatpush1.bf16.msra.mxu1 %v990_v17 }
 0x1cb   :  { %1024 = vmatprep.subr.bf16.mxu1 %v1613_v63  ;;  %v682_v63 = vld [vmem:[%s1854_s7 + $0x10] sm:$0xff] }
 0x1cd   :  { %972 = vmatmul.mubr.msk.f32.vlgmr.msra.gmra.mrb[4].mxu1 %vm403_vm12, %v680_v4 }
 0x1ce   :  { %766 = vmatprep.mubr.f32.mxu1 %v1057_v20  ;;  %1032 = vmatpush1.bf16.msra.mxu1 %v1624_v47  ;;  %v683_v47 = vld [vmem:[%s1854_s7 + $0x18] sm:$0xff] }
 0x1cf   :  { %1025 = vmatprep.subr.bf16.mxu1 %v1626_v53 }
 0x1d1   :  { %973 = vmatmul.mubr.msk.f32.gmra.mrb[6].mxu1 %vm403_vm12, %v681_v43 }
 0x1d2   :  { %772 = vmatprep.mubr.f32.mxu1 %v1057_v20  ;;  %1033 = vmatpush1.bf16.msra.mxu1 %v1642_v62 }
 0x1d3   :  { %1026 = vmatprep.subr.bf16.mxu1 %v1645_v22 }
 0x1d5   :  { %974 = vmatmul.mubr.msk.f32.gmra.mrb[8].mxu1 %vm403_vm12, %v682_v63 }
 0x1d6   :  { %778 = vmatprep.mubr.f32.mxu1 %v1057_v20  ;;  %1034 = vmatpush1.bf16.msra.mxu1 %v1660_v52 }
 0x1d7   :  { %1027 = vmatprep.subr.bf16.mxu1 %v1663_v8 }
 0x1d9   :  { %975 = vmatmul.mubr.msk.f32.gmra.mrb[10].mxu1 %vm403_vm12, %v683_v47 }
 0x1da   :  { %1035 = vmatpush1.bf16.msra.mxu1 %v1678_v12  ;;  %905 = vmatprep.mubr.f32.mxu1 %v1057_v20 }
 0x1db   :  { %1028 = vmatprep.subr.bf16.mxu1 %v1681_v14 }
 0x1de   :  { %1036 = vmatpush1.bf16.msra.mxu1 %v1696_v2 }
 0x1df   :  { %1029 = vmatprep.subr.bf16.mxu1 %v1699_v3  ;;  %v930_v3 = vld [vmem:[%s1855_s4] sm:$0xff] }
 0x1e2   :  { %1037 = vmatpush1.bf16.msra.mxu1 %v1714_v19  ;;  %v931_v19 = vld [vmem:[%s1855_s4 + $0x8] sm:$0xff] }
 0x1e3   :  { %1030 = vmatprep.subr.bf16.mxu1 %v1717_v21 }
 0x1e6   :  { %1038 = vmatpush1.bf16.msra.mxu1 %v1732_v29 }
 0x1e7   :  { %1031 = vmatprep.subr.bf16.mxu1 %v1735_v49 }
 0x1ea   :  { %1039 = vmatpush1.bf16.msra.mxu1 %v1744_v37 }
 0x2a0   :  { %v762_v53 = vpop.f32.mrb[4].mxu1 }
 0x2a1   :  { %882 = vmatmul.mubr.f32.vlgmr.msra.gmra.mrb[8].mxu0 %v762_v53  ;;  %v764_v62 = vpop.f32.mrb[5].mxu1 }
 0x2a2   :  { %906 = vmatmul.mubr.f32.vlgmr.msra.gmra.mrb[12].mxu1 %v764_v62  ;;  %887 = vmatprep.mubr.f32.mxu0 %v1057_v20 }
 0x2a3   :  { %911 = vmatprep.mubr.f32.mxu1 %v1057_v20 }
 0x2a4   :  { %v768_v22 = vpop.f32.mrb[6].mxu1 }
 0x2a5   :  { %888 = vmatmul.mubr.f32.gmra.mrb[10].mxu0 %v768_v22  ;;  %v770_v52 = vpop.f32.mrb[7].mxu1 }
 0x2a6   :  { %912 = vmatmul.mubr.f32.gmra.mrb[14].mxu1 %v770_v52  ;;  %893 = vmatprep.mubr.f32.mxu0 %v1057_v20 }
 0x2a7   :  { %917 = vmatprep.mubr.f32.mxu1 %v1057_v20 }
 0x2a8   :  { %v774_v8 = vpop.f32.mrb[8].mxu1 }
 0x2a9   :  { %894 = vmatmul.mubr.f32.gmra.mrb[12].mxu0 %v774_v8  ;;  %v776_v12 = vpop.f32.mrb[9].mxu1 }
 0x2aa   :  { %918 = vmatmul.mubr.f32.gmra.mrb[16].mxu1 %v776_v12  ;;  %899 = vmatprep.mubr.f32.mxu0 %v1057_v20 }
 0x2ab   :  { %923 = vmatprep.mubr.f32.mxu1 %v1057_v20  ;;  %v932_v20 = vld [vmem:[%s1855_s4 + $0x10] sm:$0xff] }
 0x2ac   :  { %v780_v14 = vpop.f32.mrb[10].mxu1 }
 0x2ad   :  { %900 = vmatmul.mubr.f32.gmra.mrb[14].mxu0 %v780_v14  ;;  %v782_v2 = vpop.f32.mrb[11].mxu1 }
 0x2ae   :  { %924 = vmatmul.mubr.f32.gmra.mrb[18].mxu1 %v782_v2 }
 0x374   :  { %v883_v21 = vpop.f32.mrb[8].mxu0 }
 0x375   :  { %v938_v29 = vmul.f32 %v930_v3, %v883_v21  ;;  %v885_v49 = vpop.f32.mrb[9].mxu0  ;;  %v907_v37 = vpop.f32.mrb[12].mxu1 }
 0x376   :  { %v939_v46 = vmul.f32 %v931_v19, %v885_v49  ;;  %v909_v6 = vpop.f32.mrb[13].mxu1 }
 0x377   :  { %v946_v48 = vadd.f32 %v938_v29, %v907_v37 }
 0x378   :  { %v947_v44 = vadd.f32 %v939_v46, %v909_v6  ;;  %v889_v10 = vpop.f32.mrb[10].mxu0 }
 0x379   :  { %954 = vst [vmem:[%s1856_s9] sm:$0xff] %v946_v48  ;;  %v940_v11 = vmul.f32 %v932_v20, %v889_v10  ;;  %v891_v32 = vpop.f32.mrb[11].mxu0  ;;  %v913_v27 = vpop.f32.mrb[14].mxu1 }
 0x37a   :  { %955 = vst [vmem:[%s1856_s9 + $0x8] sm:$0xff] %v947_v44  ;;  %v941_v26 = vmul.f32 %v933_v50, %v891_v32  ;;  %v915_v1 = vpop.f32.mrb[15].mxu1 }
 0x37b   :  { %v948_v5 = vadd.f32 %v940_v11, %v913_v27 }
 0x37c   :  { %v949_v54 = vadd.f32 %v941_v26, %v915_v1  ;;  %v895_v38 = vpop.f32.mrb[12].mxu0 }
 0x37d   :  { %956 = vst [vmem:[%s1856_s9 + $0x10] sm:$0xff] %v948_v5  ;;  %v942_v55 = vmul.f32 %v934_v34, %v895_v38  ;;  %v897_v24 = vpop.f32.mrb[13].mxu0  ;;  %v919_v60 = vpop.f32.mrb[16].mxu1 }
 0x37e   :  { %957 = vst [vmem:[%s1856_s9 + $0x18] sm:$0xff] %v949_v54  ;;  %v943_v56 = vmul.f32 %v935_v9, %v897_v24  ;;  %v921_v57 = vpop.f32.mrb[17].mxu1 }
 0x37f   :  { %v950_v58 = vadd.f32 %v942_v55, %v919_v60 }
 0x380   :  { %v951_v61 = vadd.f32 %v943_v56, %v921_v57  ;;  %v901_v18 = vpop.f32.mrb[14].mxu0 }
 0x381   :  { %958 = vst [vmem:[%s1856_s9 + $0x20] sm:$0xff] %v950_v58  ;;  %v944_v31 = vmul.f32 %v936_v30, %v901_v18  ;;  %v903_v41 = vpop.f32.mrb[15].mxu0  ;;  %v925_v0 = vpop.f32.mrb[18].mxu1 }
 0x382   :  { %959 = vst [vmem:[%s1856_s9 + $0x28] sm:$0xff] %v951_v61  ;;  %v945_v33 = vmul.f32 %v937_v59, %v903_v41  ;;  %v927_v13 = vpop.f32.mrb[19].mxu1 }
 0x383   :  { %v952_v39 = vadd.f32 %v944_v31, %v925_v0 }
 0x384   :  { %v953_v15 = vadd.f32 %v945_v33, %v927_v13 }
 0x385   :  { %960 = vst [vmem:[%s1856_s9 + $0x30] sm:$0xff] %v952_v39 }
 0x386   :  { %961 = vst [vmem:[%s1856_s9 + $0x38] sm:$0xff] %v953_v15 }

</bundles_post_ra>
